<compile_context>
chip_gen: v5e
topology: v5e:2x2
jax: 0.10.0
libtpu: 0.0.40
codegen_flags: <defaults>
</compile_context>

<pallas_src>
import jax
import jax.numpy as jnp
from jax import lax
from jax.experimental import pallas as pl
from jax.experimental.pallas import tpu as pltpu


def repertoire_kernel(prog_ref, reg_ref, wt_ref, b_ref, out_ref):
    # prog_ref: SMEM int32[P] (scalar prefetch)
    # reg_ref : VMEM (TB, Rp) f32        -- this core's tile of register rows
    # wt_ref  : VMEM (F, Rp, Rp) f32     -- ALL pre-transposed weights, resident
    # b_ref   : VMEM (F, 1, Rp) f32      -- ALL biases, resident
    # out_ref : VMEM (TB, Rp) f32
    P = prog_ref.shape[0]          # static trip count
    x0 = reg_ref[...]              # read registers exactly once

    def body(step, x):
        f = prog_ref[step]                     # scalar program entry
        fi = jnp.maximum(f, 0)                 # clamp so the load is in-bounds
        w = wt_ref[fi]                         # (Rp, Rp) dynamic VMEM slice
        bias = b_ref[fi]                       # (1, Rp)
        y = jnp.tanh(jnp.dot(x, w, preferred_element_type=jnp.float32) + bias)
        # skipped (negative) entries keep the old registers; straight-line select
        return jnp.where(f >= 0, y, x)

    out_ref[...] = lax.fori_loop(0, P, body, x0, unroll=(P <= 8))


def repertoire_forward(registers, program, W, b):
    """registers: (n_walkers, batch, R) or (B, R); program: (P,) int;
    W: (F, R, R) as in nn.Linear (out, in); b: (F, R)."""
    F, R, _ = W.shape
    orig_shape = registers.shape
    orig_dtype = registers.dtype
    reshape = registers.ndim == 3
    regs2d = registers.reshape(-1, R) if reshape else registers
    B = regs2d.shape[0]
    P = int(program.shape[0])

    # Empty program: forward() is the identity on the registers.
    if P == 0:
        return registers

    # --- lane / sublane padding -------------------------------------------
    LANES, SUB = 128, 8
    Rp = ((R + LANES - 1) // LANES) * LANES          # pad registers to full lanes
    TB = min(((B + SUB - 1) // SUB) * SUB, 256)       # row tile per grid step
    B_pad = ((B + TB - 1) // TB) * TB
    nb = B_pad // TB

    # Pre-transpose weights (kernel does x @ Wt[f]) and zero-pad to Rp.
    # Padded input rows / output cols of Wt and padded bias lanes are zero,
    # so padded lanes stay exactly 0 through every tanh(x @ Wt + b) step.
    Wt = jnp.transpose(W, (0, 2, 1)).astype(jnp.float32)
    Wt_p = jnp.zeros((F, Rp, Rp), jnp.float32).at[:, :R, :R].set(Wt)
    b_p = jnp.zeros((F, 1, Rp), jnp.float32).at[:, 0, :R].set(
        b.astype(jnp.float32))
    regs_p = jnp.zeros((B_pad, Rp), jnp.float32).at[:B, :R].set(
        regs2d.astype(jnp.float32))

    out = pl.pallas_call(
        repertoire_kernel,
        out_shape=jax.ShapeDtypeStruct((B_pad, Rp), jnp.float32),
        grid_spec=pltpu.PrefetchScalarGridSpec(
            num_scalar_prefetch=1,
            grid=(nb,),
            in_specs=[
                # register rows: one tile per (parallel) grid step
                pl.BlockSpec((TB, Rp), lambda i, prog: (i, 0)),
                # all weights / biases resident (constant block index)
                pl.BlockSpec((F, Rp, Rp), lambda i, prog: (0, 0, 0)),
                pl.BlockSpec((F, 1, Rp), lambda i, prog: (0, 0, 0)),
            ],
            out_specs=pl.BlockSpec((TB, Rp), lambda i, prog: (i, 0)),
        ),
        compiler_params=pltpu.CompilerParams(
            dimension_semantics=("parallel",)),   # B-tiles are independent
    )(program.astype(jnp.int32), regs_p, Wt_p, b_p)

    out = out[:B, :R].astype(orig_dtype)
    return out.reshape(orig_shape) if reshape else out


def reference_forward(registers, program, W, b):
    """Pure-JAX mirror of BaseRepertoire.forward for verification."""
    R = W.shape[-1]
    reshape = registers.ndim == 3
    orig_shape = registers.shape
    regs = registers.reshape(-1, R) if reshape else registers
    for f in [int(v) for v in program]:
        if f < 0:
            continue
        regs = jnp.tanh(regs @ W[f].T + b[f])
    return regs.reshape(orig_shape) if reshape else regs


if __name__ == "__main__":
    n_walkers, batch_size = 2, 4
    n_registers = 32          # R
    n_functions = 4           # F

    key = jax.random.PRNGKey(0)
    k_reg, k_w, k_b = jax.random.split(key, 3)

    # Deterministic parameter init (nn.Linear-style uniform +-1/sqrt(R))
    bound = 1.0 / jnp.sqrt(jnp.float32(n_registers))
    W = jax.random.uniform(k_w, (n_functions, n_registers, n_registers),
                           jnp.float32, -bound, bound)
    b = jax.random.uniform(k_b, (n_functions, n_registers),
                           jnp.float32, -bound, bound)

    registers = jax.random.normal(
        k_reg, (n_walkers, batch_size, n_registers), jnp.float32)

    # program with a negative (skipped) entry, like the PyTorch forward allows
    program = jnp.array([2, 0, -1, 3, 1, 2], dtype=jnp.int32)

    out = repertoire_forward(registers, program, W, b)
    out = jax.block_until_ready(out)

    ref = reference_forward(registers, program, W, b)
    assert out.shape == registers.shape
    assert out.dtype == registers.dtype
    assert jnp.allclose(out, ref, atol=1e-5, rtol=1e-5), "mismatch vs reference"

    # empty-program guard: identity
    out_empty = repertoire_forward(registers, jnp.zeros((0,), jnp.int32), W, b)
    assert jnp.allclose(out_empty, registers)

    print("KERNEL_OK")
</pallas_src>

<mosaic_0001>
module attributes {stable_mosaic.version = 11 : i64} {
  func.func @repertoire_kernel(%arg0: i32, %arg1: memref<6xi32, #tpu.memory_space<smem>>, %arg2: memref<8x128xf32, #tpu.memory_space<vmem>>, %arg3: memref<4x128x128xf32, #tpu.memory_space<vmem>>, %arg4: memref<4x1x128xf32, #tpu.memory_space<vmem>>, %arg5: memref<8x128xf32, #tpu.memory_space<vmem>>) attributes {dimension_semantics = [#tpu.dimension_semantics<parallel>], iteration_bounds = array<i64: 1>, scalar_prefetch = 1 : i64, scratch_operands = 0 : i64, tpu.core_type = #tpu.core_type<tc>, window_params = [{transform_indices = @transform_0, window_bounds = array<i64: 8, 128>}, {pipeline_mode = #tpu.pipeline_mode<synchronous>, transform_indices = @transform_1, window_bounds = array<i64: 4, 128, 128>}, {pipeline_mode = #tpu.pipeline_mode<synchronous>, transform_indices = @transform_2, window_bounds = array<i64: 4, 1, 128>}, {transform_indices = @transform_3, window_bounds = array<i64: 8, 128>}]} {
    %c0 = arith.constant 0 : index
    %c0_0 = arith.constant 0 : index
    %0 = vector.load %arg2[%c0, %c0_0] : memref<8x128xf32, #tpu.memory_space<vmem>>, vector<8x128xf32>
    %c0_i32 = arith.constant 0 : i32
    %1 = arith.index_cast %c0_i32 : i32 to index
    %2 = memref.load %arg1[%1] : memref<6xi32, #tpu.memory_space<smem>>
    %c0_i32_1 = arith.constant 0 : i32
    %3 = arith.maxsi %2, %c0_i32_1 : i32
    %4 = arith.index_cast %3 : i32 to index
    %c0_2 = arith.constant 0 : index
    %c0_3 = arith.constant 0 : index
    %5 = vector.load %arg3[%4, %c0_2, %c0_3] : memref<4x128x128xf32, #tpu.memory_space<vmem>>, vector<1x128x128xf32>
    %6 = vector.shape_cast %5 : vector<1x128x128xf32> to vector<128x128xf32>
    %7 = arith.index_cast %3 : i32 to index
    %c0_4 = arith.constant 0 : index
    %c0_5 = arith.constant 0 : index
    %8 = vector.load %arg4[%7, %c0_4, %c0_5] : memref<4x1x128xf32, #tpu.memory_space<vmem>>, vector<1x1x128xf32>
    %9 = vector.shape_cast %8 : vector<1x1x128xf32> to vector<1x128xf32>
    %cst = arith.constant dense<0.000000e+00> : vector<8x128xf32>
    %10 = tpu.matmul %0, %6, %cst {dimension_numbers = #tpu.dot_dimension_numbers<[1], [0], [0], [1], [0, 0, 1, 1], [], []>} : vector<8x128xf32>, vector<128x128xf32>, vector<8x128xf32> -> vector<8x128xf32>
    %11 = vector.broadcast %9 : vector<1x128xf32> to vector<8x128xf32>
    %12 = arith.addf %10, %11 : vector<8x128xf32>
    %13 = math.tanh %12 : vector<8x128xf32>
    %c0_i32_6 = arith.constant 0 : i32
    %14 = arith.cmpi sge, %2, %c0_i32_6 : i32
    %15 = arith.select %14, %13, %0 : vector<8x128xf32>
    %c1_i32 = arith.constant 1 : i32
    %16 = arith.index_cast %c1_i32 : i32 to index
    %17 = memref.load %arg1[%16] : memref<6xi32, #tpu.memory_space<smem>>
    %c0_i32_7 = arith.constant 0 : i32
    %18 = arith.maxsi %17, %c0_i32_7 : i32
    %19 = arith.index_cast %18 : i32 to index
    %c0_8 = arith.constant 0 : index
    %c0_9 = arith.constant 0 : index
    %20 = vector.load %arg3[%19, %c0_8, %c0_9] : memref<4x128x128xf32, #tpu.memory_space<vmem>>, vector<1x128x128xf32>
    %21 = vector.shape_cast %20 : vector<1x128x128xf32> to vector<128x128xf32>
    %22 = arith.index_cast %18 : i32 to index
    %c0_10 = arith.constant 0 : index
    %c0_11 = arith.constant 0 : index
    %23 = vector.load %arg4[%22, %c0_10, %c0_11] : memref<4x1x128xf32, #tpu.memory_space<vmem>>, vector<1x1x128xf32>
    %24 = vector.shape_cast %23 : vector<1x1x128xf32> to vector<1x128xf32>
    %cst_12 = arith.constant dense<0.000000e+00> : vector<8x128xf32>
    %25 = tpu.matmul %15, %21, %cst_12 {dimension_numbers = #tpu.dot_dimension_numbers<[1], [0], [0], [1], [0, 0, 1, 1], [], []>} : vector<8x128xf32>, vector<128x128xf32>, vector<8x128xf32> -> vector<8x128xf32>
    %26 = vector.broadcast %24 : vector<1x128xf32> to vector<8x128xf32>
    %27 = arith.addf %25, %26 : vector<8x128xf32>
    %28 = math.tanh %27 : vector<8x128xf32>
    %c0_i32_13 = arith.constant 0 : i32
    %29 = arith.cmpi sge, %17, %c0_i32_13 : i32
    %30 = arith.select %29, %28, %15 : vector<8x128xf32>
    %c2_i32 = arith.constant 2 : i32
    %31 = arith.index_cast %c2_i32 : i32 to index
    %32 = memref.load %arg1[%31] : memref<6xi32, #tpu.memory_space<smem>>
    %c0_i32_14 = arith.constant 0 : i32
    %33 = arith.maxsi %32, %c0_i32_14 : i32
    %34 = arith.index_cast %33 : i32 to index
    %c0_15 = arith.constant 0 : index
    %c0_16 = arith.constant 0 : index
    %35 = vector.load %arg3[%34, %c0_15, %c0_16] : memref<4x128x128xf32, #tpu.memory_space<vmem>>, vector<1x128x128xf32>
    %36 = vector.shape_cast %35 : vector<1x128x128xf32> to vector<128x128xf32>
    %37 = arith.index_cast %33 : i32 to index
    %c0_17 = arith.constant 0 : index
    %c0_18 = arith.constant 0 : index
    %38 = vector.load %arg4[%37, %c0_17, %c0_18] : memref<4x1x128xf32, #tpu.memory_space<vmem>>, vector<1x1x128xf32>
    %39 = vector.shape_cast %38 : vector<1x1x128xf32> to vector<1x128xf32>
    %cst_19 = arith.constant dense<0.000000e+00> : vector<8x128xf32>
    %40 = tpu.matmul %30, %36, %cst_19 {dimension_numbers = #tpu.dot_dimension_numbers<[1], [0], [0], [1], [0, 0, 1, 1], [], []>} : vector<8x128xf32>, vector<128x128xf32>, vector<8x128xf32> -> vector<8x128xf32>
    %41 = vector.broadcast %39 : vector<1x128xf32> to vector<8x128xf32>
    %42 = arith.addf %40, %41 : vector<8x128xf32>
    %43 = math.tanh %42 : vector<8x128xf32>
    %c0_i32_20 = arith.constant 0 : i32
    %44 = arith.cmpi sge, %32, %c0_i32_20 : i32
    %45 = arith.select %44, %43, %30 : vector<8x128xf32>
    %c3_i32 = arith.constant 3 : i32
    %46 = arith.index_cast %c3_i32 : i32 to index
    %47 = memref.load %arg1[%46] : memref<6xi32, #tpu.memory_space<smem>>
    %c0_i32_21 = arith.constant 0 : i32
    %48 = arith.maxsi %47, %c0_i32_21 : i32
    %49 = arith.index_cast %48 : i32 to index
    %c0_22 = arith.constant 0 : index
    %c0_23 = arith.constant 0 : index
    %50 = vector.load %arg3[%49, %c0_22, %c0_23] : memref<4x128x128xf32, #tpu.memory_space<vmem>>, vector<1x128x128xf32>
    %51 = vector.shape_cast %50 : vector<1x128x128xf32> to vector<128x128xf32>
    %52 = arith.index_cast %48 : i32 to index
    %c0_24 = arith.constant 0 : index
    %c0_25 = arith.constant 0 : index
    %53 = vector.load %arg4[%52, %c0_24, %c0_25] : memref<4x1x128xf32, #tpu.memory_space<vmem>>, vector<1x1x128xf32>
    %54 = vector.shape_cast %53 : vector<1x1x128xf32> to vector<1x128xf32>
    %cst_26 = arith.constant dense<0.000000e+00> : vector<8x128xf32>
    %55 = tpu.matmul %45, %51, %cst_26 {dimension_numbers = #tpu.dot_dimension_numbers<[1], [0], [0], [1], [0, 0, 1, 1], [], []>} : vector<8x128xf32>, vector<128x128xf32>, vector<8x128xf32> -> vector<8x128xf32>
    %56 = vector.broadcast %54 : vector<1x128xf32> to vector<8x128xf32>
    %57 = arith.addf %55, %56 : vector<8x128xf32>
    %58 = math.tanh %57 : vector<8x128xf32>
    %c0_i32_27 = arith.constant 0 : i32
    %59 = arith.cmpi sge, %47, %c0_i32_27 : i32
    %60 = arith.select %59, %58, %45 : vector<8x128xf32>
    %c4_i32 = arith.constant 4 : i32
    %61 = arith.index_cast %c4_i32 : i32 to index
    %62 = memref.load %arg1[%61] : memref<6xi32, #tpu.memory_space<smem>>
    %c0_i32_28 = arith.constant 0 : i32
    %63 = arith.maxsi %62, %c0_i32_28 : i32
    %64 = arith.index_cast %63 : i32 to index
    %c0_29 = arith.constant 0 : index
    %c0_30 = arith.constant 0 : index
    %65 = vector.load %arg3[%64, %c0_29, %c0_30] : memref<4x128x128xf32, #tpu.memory_space<vmem>>, vector<1x128x128xf32>
    %66 = vector.shape_cast %65 : vector<1x128x128xf32> to vector<128x128xf32>
    %67 = arith.index_cast %63 : i32 to index
    %c0_31 = arith.constant 0 : index
    %c0_32 = arith.constant 0 : index
    %68 = vector.load %arg4[%67, %c0_31, %c0_32] : memref<4x1x128xf32, #tpu.memory_space<vmem>>, vector<1x1x128xf32>
    %69 = vector.shape_cast %68 : vector<1x1x128xf32> to vector<1x128xf32>
    %cst_33 = arith.constant dense<0.000000e+00> : vector<8x128xf32>
    %70 = tpu.matmul %60, %66, %cst_33 {dimension_numbers = #tpu.dot_dimension_numbers<[1], [0], [0], [1], [0, 0, 1, 1], [], []>} : vector<8x128xf32>, vector<128x128xf32>, vector<8x128xf32> -> vector<8x128xf32>
    %71 = vector.broadcast %69 : vector<1x128xf32> to vector<8x128xf32>
    %72 = arith.addf %70, %71 : vector<8x128xf32>
    %73 = math.tanh %72 : vector<8x128xf32>
    %c0_i32_34 = arith.constant 0 : i32
    %74 = arith.cmpi sge, %62, %c0_i32_34 : i32
    %75 = arith.select %74, %73, %60 : vector<8x128xf32>
    %c5_i32 = arith.constant 5 : i32
    %76 = arith.index_cast %c5_i32 : i32 to index
    %77 = memref.load %arg1[%76] : memref<6xi32, #tpu.memory_space<smem>>
    %c0_i32_35 = arith.constant 0 : i32
    %78 = arith.maxsi %77, %c0_i32_35 : i32
    %79 = arith.index_cast %78 : i32 to index
    %c0_36 = arith.constant 0 : index
    %c0_37 = arith.constant 0 : index
    %80 = vector.load %arg3[%79, %c0_36, %c0_37] : memref<4x128x128xf32, #tpu.memory_space<vmem>>, vector<1x128x128xf32>
    %81 = vector.shape_cast %80 : vector<1x128x128xf32> to vector<128x128xf32>
    %82 = arith.index_cast %78 : i32 to index
    %c0_38 = arith.constant 0 : index
    %c0_39 = arith.constant 0 : index
    %83 = vector.load %arg4[%82, %c0_38, %c0_39] : memref<4x1x128xf32, #tpu.memory_space<vmem>>, vector<1x1x128xf32>
    %84 = vector.shape_cast %83 : vector<1x1x128xf32> to vector<1x128xf32>
    %cst_40 = arith.constant dense<0.000000e+00> : vector<8x128xf32>
    %85 = tpu.matmul %75, %81, %cst_40 {dimension_numbers = #tpu.dot_dimension_numbers<[1], [0], [0], [1], [0, 0, 1, 1], [], []>} : vector<8x128xf32>, vector<128x128xf32>, vector<8x128xf32> -> vector<8x128xf32>
    %86 = vector.broadcast %84 : vector<1x128xf32> to vector<8x128xf32>
    %87 = arith.addf %85, %86 : vector<8x128xf32>
    %88 = math.tanh %87 : vector<8x128xf32>
    %c0_i32_41 = arith.constant 0 : i32
    %89 = arith.cmpi sge, %77, %c0_i32_41 : i32
    %90 = arith.select %89, %88, %75 : vector<8x128xf32>
    %c6_i32 = arith.constant 6 : i32
    %c0_42 = arith.constant 0 : index
    %c0_43 = arith.constant 0 : index
    %91 = vector.load %arg5[%c0_42, %c0_43] : memref<8x128xf32, #tpu.memory_space<vmem>>, vector<8x128xf32>
    tpu.vector_store %arg5[%c0_42, %c0_43], %90 {strides = array<i32>} : memref<8x128xf32, #tpu.memory_space<vmem>>, vector<8x128xf32>,
    return
  }
  func.func @transform_0(%arg0: i32, %arg1: memref<6xi32, #tpu.memory_space<smem>>) -> (i32, i32) {
    %c0_i32 = arith.constant 0 : i32
    %c0_i32_0 = arith.constant 0 : i32
    return %arg0, %c0_i32 : i32, i32
  }
  func.func @transform_1(%arg0: i32, %arg1: memref<6xi32, #tpu.memory_space<smem>>) -> (i32, i32, i32) {
    %c0_i32 = arith.constant 0 : i32
    %c0_i32_0 = arith.constant 0 : i32
    %c0_i32_1 = arith.constant 0 : i32
    %c0_i32_2 = arith.constant 0 : i32
    return %c0_i32, %c0_i32_0, %c0_i32_1 : i32, i32, i32
  }
  func.func @transform_2(%arg0: i32, %arg1: memref<6xi32, #tpu.memory_space<smem>>) -> (i32, i32, i32) {
    %c0_i32 = arith.constant 0 : i32
    %c0_i32_0 = arith.constant 0 : i32
    %c0_i32_1 = arith.constant 0 : i32
    %c0_i32_2 = arith.constant 0 : i32
    return %c0_i32, %c0_i32_0, %c0_i32_1 : i32, i32, i32
  }
  func.func @transform_3(%arg0: i32, %arg1: memref<6xi32, #tpu.memory_space<smem>>) -> (i32, i32) {
    %c0_i32 = arith.constant 0 : i32
    %c0_i32_0 = arith.constant 0 : i32
    return %arg0, %c0_i32 : i32, i32
  }
}

</mosaic_0001>

<bundles_post_ra>
// kernel: tpu_custom_call.1
= control target key start
LH: loop header
LB: loop body
LE: loop exit
PB: predicated region body
PF: predicated region fallthrough
CT: control target
= control target key end

     0   :  { %s573_s18 = smov [#allocation3]   ;;  %s794_s0 = inlined_call_operand.hbm [shape: s32[6], index: 0, kind: input, shape index: {}]   ;;  %s795_s1 = inlined_call_operand.hbm [shape: f32[8,128], index: 1, kind: input, shape index: {}]   ;;  %s796_s2 = inlined_call_operand.hbm [shape: f32[4,128,128], index: 2, kind: input, shape index: {}]   ;;  %s797_s3 = inlined_call_operand.hbm [shape: f32[4,1,128], index: 3, kind: input, shape index: {}]   ;;  %s798_s4 = inlined_call_operand.hbm [shape: f32[8,128], index: 4, kind: output, shape index: {}]  }
   0x1   :  { %s10_s17 = sshll.u32 %s794_s0, 4  ;;  %s11_s17 = int_to_ptr.hbm [resolvable:$true] %s10_s17 }
   0x2   :  { %13 = dma.hbm_to_smem %s11_s17, 16, %s573_s18, [#allocation2] }
   0x3   :  { %565 = dma.done.wait [#allocation2], 16 }
   0x4   :  { %566 = vsyncadd [#allocation2], 4294967280 }
   0x5   :  { %16 = sfence }
   0x6   :  { %17 = vsyncpa [#allocation5], 0 }
   0x7   :  { %18 = vsyncpa [#allocation8], 0  ;;  %s35_s21 = sshll.u32 %s796_s2, 4  ;;  %s36_s21 = int_to_ptr.hbm [resolvable:$true] %s35_s21 }
   0x8   :  { %19 = vsyncpa [#allocation6], 0  ;;  %s574_s22 = smov [#allocation7]   ;;  %s25_s0 = sshll.u32 %s795_s1, 4  ;;  %s26_s0 = int_to_ptr.hbm [resolvable:$true] %s25_s0 }
   0x9   :  { %s37_s23 = sshll.u32 %s574_s22, 4  ;;  %s575_s26 = smov 128   ;;  %s38_s23 = int_to_ptr.vmem [resolvable:$true] %s37_s23 }
   0xa   :  { %s576_s27 = smov 8   ;;  %s577_s28 = smov [#allocation4]  }
   0xb   :  { %43 = dma.hbm_to_vmem [thread:$0]  %s36_s21, 8192, %s38_s23, [#allocation8], %s575_s26, %s575_s26, %s576_s27  }
   0xc   :  { %s27_s29 = sshll.u32 %s577_s28, 4  ;;  %s48_s6 = sshll.u32 %s797_s3, 4  ;;  %s28_s29 = int_to_ptr.vmem [resolvable:$true] %s27_s29  ;;  %s49_s6 = int_to_ptr.hbm [resolvable:$true] %s48_s6 }
   0xd   :  { %30 = dma.hbm_to_vmem [thread:$0]  %s26_s0, 128, %s28_s29, [#allocation5]  }
   0xe   :  { %s578_s2 = smov [#allocation9]   ;;  %s579_s8 = smov 16  }
   0xf   :  { %s50_s7 = sshll.u32 %s578_s2, 4  ;;  %s580_s9 = smov 1   ;;  %s51_s7 = int_to_ptr.vmem [resolvable:$true] %s50_s7 }
  0x10   :  { %56 = dma.hbm_to_vmem [thread:$0]  %s49_s6, 64, %s51_s7, [#allocation8], %s579_s8, %s579_s8, %s580_s9  }
  0x11   :  { %567 = dma.done.wait [#allocation5], 128  }
  0x12   :  { %568 = vsyncadd [#allocation5], 4294967168 }
  0x13   :  { %569 = dma.done.wait [#allocation8], 8256  }
  0x14   :  { %570 = vsyncadd [#allocation8], 4294959040  ;;  %s619_s1 = sld [smem:[#allocation3]]  ;;  %v69_v26 = vld [vmem:[#allocation4] sm:$0xff] }
  0x15   :  { %s621_s10 = sld [smem:[#allocation3 + $0x1]] }
  0x16   :  { %s665_s18 = sld [smem:[#allocation3 + $0x2]] }
  0x17   :  { %s694_s24 = sld [smem:[#allocation3 + $0x3]] }
  0x18   :  { %s723_s29 = sld [smem:[#allocation3 + $0x4]] }
  0x19   :  { %s752_s8 = sld [smem:[#allocation3 + $0x5]] }
  0x1a   :  { %p71_p0 = scmp.gt.s32.totalorder %s619_s1, 0  ;;  %p117_p3 = scmp.ge.s32.totalorder %s619_s1, 0 }
  0x1b   :  { %p123_p1 = scmp.gt.s32.totalorder %s621_s10, 0  ;;  %p169_p5 = scmp.ge.s32.totalorder %s621_s10, 0 }
  0x1c   :  { %s626_s3 = scalar_select %p71_p0, %s619_s1, 0 }
  0x1d   :  { %s629_s11 = scalar_select %p123_p1, %s621_s10, 0 }
  0x1e   :  { %s419_s12 = sshll.u32 %s626_s3, 7  ;;  %s91_s14 = scalar_lea.vmem [#allocation9], %s626_s3 }
  0x1f   :  { %s421_s13 = sshll.u32 %s629_s11, 7  ;;  %s634_s15 = scalar_lea.vmem [#allocation7], %s419_s12  ;;  %v439_v43 = vld [vmem:[%s91_s14] ss:$0 sm:$0xff] }
  0x20   :  { %v90_v0 = vld [vmem:[%s634_s15 + $0x78] sm:$0xff]  ;;  %v89_v1 = vld [vmem:[%s634_s15 + $0x70] sm:$0xff]  ;;  %v88_v2 = vld [vmem:[%s634_s15 + $0x68] sm:$0xff]  ;;  %s640_s16 = scalar_lea.vmem [#allocation7], %s421_s13  ;;  %s143_s17 = scalar_lea.vmem [#allocation9], %s629_s11 }
  0x21   :  { %96 = vmatpush.msra.mxu0 %v90_v0  ;;  %v87_v3 = vld [vmem:[%s634_s15 + $0x60] sm:$0xff]  ;;  %v142_v4 = vld [vmem:[%s640_s16 + $0x78] sm:$0xff]  ;;  %v141_v5 = vld [vmem:[%s640_s16 + $0x70] sm:$0xff]  ;;  %p175_p2 = scmp.gt.s32.totalorder %s665_s18, 0  ;;  %p227_p4 = scmp.gt.s32.totalorder %s694_s24, 0 }
  0x22   :  { %v86_v6 = vld [vmem:[%s634_s15 + $0x58] sm:$0xff]  ;;  %148 = vmatpush.msra.mxu1 %v142_v4  ;;  %v140_v7 = vld [vmem:[%s640_s16 + $0x68] sm:$0xff]  ;;  %v85_v8 = vld [vmem:[%s634_s15 + $0x50] sm:$0xff]  ;;  %s118_s22 = scalar_select %p117_p3, 1, 0 }
  0x23   :  { %97 = vmatpush.msra.mxu0 %v89_v1  ;;  %v139_v9 = vld [vmem:[%s640_s16 + $0x60] sm:$0xff]  ;;  %v84_v10 = vld [vmem:[%s634_s15 + $0x48] sm:$0xff]  ;;  %v138_v11 = vld [vmem:[%s640_s16 + $0x58] sm:$0xff]  ;;  %s671_s19 = scalar_select %p175_p2, %s665_s18, 0 }
  0x24   :  { %149 = vmatpush.msra.mxu1 %v141_v5  ;;  %v83_v12 = vld [vmem:[%s634_s15 + $0x40] sm:$0xff]  ;;  %v137_v13 = vld [vmem:[%s640_s16 + $0x50] sm:$0xff]  ;;  %v82_v14 = vld [vmem:[%s634_s15 + $0x38] sm:$0xff]  ;;  %v119_v46 = vstv %s118_s22  ;;  %s700_s25 = scalar_select %p227_p4, %s694_s24, 0 }
  0x25   :  { %98 = vmatpush.msra.mxu0 %v88_v2  ;;  %v136_v15 = vld [vmem:[%s640_s16 + $0x48] sm:$0xff]  ;;  %v81_v16 = vld [vmem:[%s634_s15 + $0x30] sm:$0xff]  ;;  %v135_v17 = vld [vmem:[%s640_s16 + $0x40] sm:$0xff]  ;;  %s423_s20 = sshll.u32 %s671_s19, 7  ;;  %vm120_vm0 = vcmp.eq.s32.totalorder %v119_v46, 1  ;;  %s195_s23 = scalar_lea.vmem [#allocation9], %s671_s19 }
  0x26   :  { %150 = vmatpush.msra.mxu1 %v140_v7  ;;  %v80_v18 = vld [vmem:[%s634_s15 + $0x28] sm:$0xff]  ;;  %v134_v19 = vld [vmem:[%s640_s16 + $0x38] sm:$0xff]  ;;  %v79_v20 = vld [vmem:[%s634_s15 + $0x20] sm:$0xff]  ;;  %s678_s21 = scalar_lea.vmem [#allocation7], %s423_s20  ;;  %s425_s0 = sshll.u32 %s700_s25, 7 }
  0x27   :  { %99 = vmatpush.msra.mxu0 %v87_v3  ;;  %v133_v21 = vld [vmem:[%s640_s16 + $0x30] sm:$0xff]  ;;  %v78_v22 = vld [vmem:[%s634_s15 + $0x18] sm:$0xff]  ;;  %v76_v24 = vld [vmem:[%s634_s15 + $0x8] sm:$0xff]  ;;  %s707_s26 = scalar_lea.vmem [#allocation7], %s425_s0  ;;  %s247_s28 = scalar_lea.vmem [#allocation9], %s700_s25 }
  0x28   :  { %151 = vmatpush.msra.mxu1 %v139_v9  ;;  %v77_v23 = vld [vmem:[%s634_s15 + $0x10] sm:$0xff]  ;;  %v75_v25 = vld [vmem:[%s634_s15] sm:$0xff]  ;;  %v132_v27 = vld [vmem:[%s640_s16 + $0x28] sm:$0xff]  ;;  %s170_s27 = scalar_select %p169_p5, 1, 0 }
  0x29   :  { %100 = vmatpush.msra.mxu0 %v86_v6  ;;  %v131_v28 = vld [vmem:[%s640_s16 + $0x20] sm:$0xff]  ;;  %v130_v29 = vld [vmem:[%s640_s16 + $0x18] sm:$0xff]  ;;  %v129_v30 = vld [vmem:[%s640_s16 + $0x10] sm:$0xff]  ;;  %p279_p6 = scmp.gt.s32.totalorder %s723_s29, 0  ;;  %p221_p7 = scmp.ge.s32.totalorder %s665_s18, 0 }
  0x2a   :  { %152 = vmatpush.msra.mxu1 %v138_v11  ;;  %v128_v31 = vld [vmem:[%s640_s16 + $0x8] sm:$0xff]  ;;  %v127_v32 = vld [vmem:[%s640_s16] sm:$0xff]  ;;  %v194_v33 = vld [vmem:[%s678_s21 + $0x78] sm:$0xff]  ;;  %v171_v4 = vstv %s170_s27  ;;  %p331_p8 = scmp.gt.s32.totalorder %s752_s8, 0  ;;  %p273_p9 = scmp.ge.s32.totalorder %s694_s24, 0 }
  0x2b   :  { %101 = vmatpush.msra.mxu0 %v85_v8  ;;  %v193_v34 = vld [vmem:[%s678_s21 + $0x70] sm:$0xff]  ;;  %200 = vmatpush.msra.mxu2 %v194_v33  ;;  %v192_v35 = vld [vmem:[%s678_s21 + $0x68] sm:$0xff]  ;;  %v191_v36 = vld [vmem:[%s678_s21 + $0x60] sm:$0xff]  ;;  %vm172_vm1 = vcmp.eq.s32.totalorder %v171_v4, 1  ;;  %s729_s30 = scalar_select %p279_p6, %s723_s29, 0 }
  0x2c   :  { %153 = vmatpush.msra.mxu1 %v137_v13  ;;  %v190_v37 = vld [vmem:[%s678_s21 + $0x58] sm:$0xff]  ;;  %v189_v38 = vld [vmem:[%s678_s21 + $0x50] sm:$0xff]  ;;  %v188_v39 = vld [vmem:[%s678_s21 + $0x48] sm:$0xff]  ;;  %s222_s2 = scalar_select %p221_p7, 1, 0 }
  0x2d   :  { %102 = vmatpush.msra.mxu0 %v84_v10  ;;  %201 = vmatpush.msra.mxu2 %v193_v34  ;;  %v187_v40 = vld [vmem:[%s678_s21 + $0x40] sm:$0xff]  ;;  %v186_v41 = vld [vmem:[%s678_s21 + $0x38] sm:$0xff]  ;;  %v185_v42 = vld [vmem:[%s678_s21 + $0x30] sm:$0xff]  ;;  %s427_s5 = sshll.u32 %s729_s30, 7  ;;  %s299_s7 = scalar_lea.vmem [#allocation9], %s729_s30 }
  0x2e   :  { %154 = vmatpush.msra.mxu1 %v136_v15  ;;  %v184_v49 = vld [vmem:[%s678_s21 + $0x28] sm:$0xff]  ;;  %v183_v50 = vld [vmem:[%s678_s21 + $0x20] sm:$0xff]  ;;  %v182_v51 = vld [vmem:[%s678_s21 + $0x18] sm:$0xff]  ;;  %s736_s6 = scalar_lea.vmem [#allocation7], %s427_s5  ;;  %p325_p10 = scmp.ge.s32.totalorder %s723_s29, 0 }
  0x2f   :  { %103 = vmatpush.msra.mxu0 %v83_v12  ;;  %202 = vmatpush.msra.mxu2 %v192_v35  ;;  %v181_v52 = vld [vmem:[%s678_s21 + $0x10] sm:$0xff]  ;;  %v180_v53 = vld [vmem:[%s678_s21 + $0x8] sm:$0xff]  ;;  %v179_v54 = vld [vmem:[%s678_s21] sm:$0xff]  ;;  %s758_s9 = scalar_select %p331_p8, %s752_s8, 0 }
  0x30   :  { %155 = vmatpush.msra.mxu1 %v135_v17  ;;  %v246_v55 = vld [vmem:[%s707_s26 + $0x78] sm:$0xff]  ;;  %v245_v56 = vld [vmem:[%s707_s26 + $0x70] sm:$0xff]  ;;  %v244_v57 = vld [vmem:[%s707_s26 + $0x68] sm:$0xff]  ;;  %s274_s3 = scalar_select %p273_p9, 1, 0 }
  0x31   :  { %104 = vmatpush.msra.mxu0 %v82_v14  ;;  %203 = vmatpush.msra.mxu2 %v191_v36  ;;  %v243_v58 = vld [vmem:[%s707_s26 + $0x60] sm:$0xff]  ;;  %v242_v59 = vld [vmem:[%s707_s26 + $0x58] sm:$0xff]  ;;  %v241_v60 = vld [vmem:[%s707_s26 + $0x50] sm:$0xff]  ;;  %s429_s1 = sshll.u32 %s758_s9, 7  ;;  %s351_s11 = scalar_lea.vmem [#allocation9], %s758_s9 }
  0x32   :  { %156 = vmatpush.msra.mxu1 %v134_v19  ;;  %252 = vmatpush.msra.mxu3 %v246_v55  ;;  %v240_v61 = vld [vmem:[%s707_s26 + $0x48] sm:$0xff]  ;;  %v239_v62 = vld [vmem:[%s707_s26 + $0x40] sm:$0xff]  ;;  %v238_v63 = vld [vmem:[%s707_s26 + $0x38] sm:$0xff]  ;;  %s765_s10 = scalar_lea.vmem [#allocation7], %s429_s1  ;;  %p377_p11 = scmp.ge.s32.totalorder %s752_s8, 0 }
  0x33   :  { %105 = vmatpush.msra.mxu0 %v81_v16  ;;  %204 = vmatpush.msra.mxu2 %v190_v37  ;;  %v237_v0 = vld [vmem:[%s707_s26 + $0x30] sm:$0xff]  ;;  %v440_v1 = vld [vmem:[%s143_s17] ss:$0 sm:$0xff]  ;;  %v236_v7 = vld [vmem:[%s707_s26 + $0x28] sm:$0xff]  ;;  %s326_s12 = scalar_select %p325_p10, 1, 0 }
  0x34   :  { %157 = vmatpush.msra.mxu1 %v133_v21  ;;  %253 = vmatpush.msra.mxu3 %v245_v56  ;;  %v235_v8 = vld [vmem:[%s707_s26 + $0x20] sm:$0xff]  ;;  %v234_v9 = vld [vmem:[%s707_s26 + $0x18] sm:$0xff]  ;;  %v233_v10 = vld [vmem:[%s707_s26 + $0x10] sm:$0xff]  ;;  %s378_s13 = scalar_select %p377_p11, 1, 0 }
  0x35   :  { %106 = vmatpush.msra.mxu0 %v80_v18  ;;  %205 = vmatpush.msra.mxu2 %v189_v38  ;;  %v232_v11 = vld [vmem:[%s707_s26 + $0x8] sm:$0xff]  ;;  %v231_v12 = vld [vmem:[%s707_s26] sm:$0xff]  ;;  %v298_v13 = vld [vmem:[%s736_s6 + $0x78] sm:$0xff]  ;;  %s581_s14 = smov [#allocation10]   ;;  %s390_s18 = sshll.u32 %s798_s4, 4  ;;  %s391_s18 = int_to_ptr.hbm [resolvable:$true] %s390_s18 }
  0x36   :  { %158 = vmatpush.msra.mxu1 %v132_v27  ;;  %254 = vmatpush.msra.mxu3 %v244_v57  ;;  %v297_v14 = vld [vmem:[%s736_s6 + $0x70] sm:$0xff]  ;;  %v296_v15 = vld [vmem:[%s736_s6 + $0x68] sm:$0xff]  ;;  %v295_v16 = vld [vmem:[%s736_s6 + $0x60] sm:$0xff]  ;;  %s388_s15 = sshll.u32 %s581_s14, 4  ;;  %s389_s15 = int_to_ptr.vmem [resolvable:$true] %s388_s15 }
  0x37   :  { %107 = vmatpush.msra.mxu0 %v79_v20  ;;  %206 = vmatpush.msra.mxu2 %v188_v39  ;;  %v294_v17 = vld [vmem:[%s736_s6 + $0x58] sm:$0xff]  ;;  %v293_v18 = vld [vmem:[%s736_s6 + $0x50] sm:$0xff]  ;;  %v292_v19 = vld [vmem:[%s736_s6 + $0x48] sm:$0xff] }
  0x38   :  { %159 = vmatpush.msra.mxu1 %v131_v28  ;;  %255 = vmatpush.msra.mxu3 %v243_v58  ;;  %v291_v20 = vld [vmem:[%s736_s6 + $0x40] sm:$0xff]  ;;  %v290_v21 = vld [vmem:[%s736_s6 + $0x38] sm:$0xff]  ;;  %v284_v33 = vld [vmem:[%s736_s6 + $0x8] sm:$0xff] }
  0x39   :  { %108 = vmatpush.msra.mxu0 %v78_v22  ;;  %207 = vmatpush.msra.mxu2 %v187_v40  ;;  %v289_v22 = vld [vmem:[%s736_s6 + $0x30] sm:$0xff]  ;;  %v283_v34 = vld [vmem:[%s736_s6] sm:$0xff]  ;;  %v350_v35 = vld [vmem:[%s765_s10 + $0x78] sm:$0xff] }
  0x3a   :  { %160 = vmatpush.msra.mxu1 %v130_v29  ;;  %256 = vmatpush.msra.mxu3 %v242_v59  ;;  %v288_v29 = vld [vmem:[%s736_s6 + $0x28] sm:$0xff]  ;;  %v349_v36 = vld [vmem:[%s765_s10 + $0x70] sm:$0xff]  ;;  %v347_v38 = vld [vmem:[%s765_s10 + $0x60] sm:$0xff] }
  0x3b   :  { %109 = vmatpush.msra.mxu0 %v77_v23  ;;  %208 = vmatpush.msra.mxu2 %v186_v41  ;;  %v441_v23 = vld [vmem:[%s195_s23] ss:$0 sm:$0xff]  ;;  %v348_v37 = vld [vmem:[%s765_s10 + $0x68] sm:$0xff]  ;;  %v346_v39 = vld [vmem:[%s765_s10 + $0x58] sm:$0xff] }
  0x3c   :  { %161 = vmatpush.msra.mxu1 %v129_v30  ;;  %257 = vmatpush.msra.mxu3 %v241_v60  ;;  %v287_v30 = vld [vmem:[%s736_s6 + $0x20] sm:$0xff]  ;;  %v345_v40 = vld [vmem:[%s765_s10 + $0x50] sm:$0xff]  ;;  %v344_v41 = vld [vmem:[%s765_s10 + $0x48] sm:$0xff]  ;;  %v327_v60 = vstv %s326_s12 }
  0x3d   :  { %110 = vmatpush.msra.mxu0 %v76_v24  ;;  %209 = vmatpush.msra.mxu2 %v185_v42  ;;  %v343_v42 = vld [vmem:[%s765_s10 + $0x40] sm:$0xff]  ;;  %v336_v55 = vld [vmem:[%s765_s10 + $0x8] sm:$0xff]  ;;  %vm328_vm4 = vcmp.eq.s32.totalorder %v327_v60, 1 }
  0x3e   :  { %162 = vmatpush.msra.mxu1 %v128_v31  ;;  %258 = vmatpush.msra.mxu3 %v240_v61  ;;  %v286_v31 = vld [vmem:[%s736_s6 + $0x18] sm:$0xff]  ;;  %v335_v56 = vld [vmem:[%s765_s10] sm:$0xff] }
  0x3f   :  { %111 = vmatpush.msra.mxu0 %v75_v25  ;;  %210 = vmatpush.msra.mxu2 %v184_v49  ;;  %v443_v57 = vld [vmem:[%s299_s7] ss:$0 sm:$0xff] }
  0x40   :  { %112 = vmatmul.f32.vlgmr.msra.gmra.mxu0 %v69_v26  ;;  %163 = vmatpush.msra.mxu1 %v127_v32  ;;  %v285_v32 = vld [vmem:[%s736_s6 + $0x10] sm:$0xff] }
  0x41   :  { %211 = vmatpush.msra.mxu2 %v183_v50  ;;  %259 = vmatpush.msra.mxu3 %v239_v62 }
  0x42   :  { %304 = vmatpush.msrb.mxu0 %v298_v13  ;;  %356 = vmatpush.msrb.mxu1 %v350_v35 }
  0x43   :  { %212 = vmatpush.msra.mxu2 %v182_v51  ;;  %260 = vmatpush.msra.mxu3 %v238_v63  ;;  %v340_v51 = vld [vmem:[%s765_s10 + $0x28] sm:$0xff]  ;;  %v444_v63 = vld [vmem:[%s351_s11] ss:$0 sm:$0xff] }
  0x44   :  { %305 = vmatpush.msrb.mxu0 %v297_v14  ;;  %357 = vmatpush.msrb.mxu1 %v349_v36 }
  0x45   :  { %213 = vmatpush.msra.mxu2 %v181_v52  ;;  %261 = vmatpush.msra.mxu3 %v237_v0  ;;  %v339_v52 = vld [vmem:[%s765_s10 + $0x20] sm:$0xff] }
  0x46   :  { %306 = vmatpush.msrb.mxu0 %v296_v15  ;;  %358 = vmatpush.msrb.mxu1 %v348_v37 }
  0x47   :  { %214 = vmatpush.msra.mxu2 %v180_v53  ;;  %262 = vmatpush.msra.mxu3 %v236_v7  ;;  %v338_v53 = vld [vmem:[%s765_s10 + $0x18] sm:$0xff] }
  0x48   :  { %307 = vmatpush.msrb.mxu0 %v295_v16  ;;  %359 = vmatpush.msrb.mxu1 %v347_v38 }
  0x49   :  { %215 = vmatpush.msra.mxu2 %v179_v54  ;;  %263 = vmatpush.msra.mxu3 %v235_v8  ;;  %v337_v54 = vld [vmem:[%s765_s10 + $0x10] sm:$0xff] }
  0x4a   :  { %308 = vmatpush.msrb.mxu0 %v294_v17  ;;  %360 = vmatpush.msrb.mxu1 %v346_v39 }
  0x4b   :  { %264 = vmatpush.msra.mxu3 %v234_v9 }
  0x4c   :  { %309 = vmatpush.msrb.mxu0 %v293_v18  ;;  %361 = vmatpush.msrb.mxu1 %v345_v40 }
  0x4d   :  { %265 = vmatpush.msra.mxu3 %v233_v10 }
  0x4e   :  { %310 = vmatpush.msrb.mxu0 %v292_v19  ;;  %362 = vmatpush.msrb.mxu1 %v344_v41 }
  0x4f   :  { %266 = vmatpush.msra.mxu3 %v232_v11 }
  0x50   :  { %311 = vmatpush.msrb.mxu0 %v291_v20  ;;  %363 = vmatpush.msrb.mxu1 %v343_v42 }
  0x51   :  { %267 = vmatpush.msra.mxu3 %v231_v12 }
  0x52   :  { %312 = vmatpush.msrb.mxu0 %v290_v21 }
  0x54   :  { %313 = vmatpush.msrb.mxu0 %v289_v22 }
  0x56   :  { %314 = vmatpush.msrb.mxu0 %v288_v29 }
  0x58   :  { %315 = vmatpush.msrb.mxu0 %v287_v30 }
  0x5a   :  { %316 = vmatpush.msrb.mxu0 %v286_v31 }
  0x5c   :  { %317 = vmatpush.msrb.mxu0 %v285_v32 }
  0x5e   :  { %318 = vmatpush.msrb.mxu0 %v284_v33 }
  0x60   :  { %319 = vmatpush.msrb.mxu0 %v283_v34 }
  0xbd   :  { %v113_v44 = vpop.f32.mrf.mxu0 }
  0xbe   :  { %v114_v45 = vadd.f32 %v439_v43, %v113_v44  ;;  %v342_v43 = vld [vmem:[%s765_s10 + $0x38] sm:$0xff]  ;;  %v341_v44 = vld [vmem:[%s765_s10 + $0x30] sm:$0xff] }
  0xbf   :  { %364 = vmatpush.msrb.mxu1 %v342_v43 }
  0xc0   :  { %445 = vtanh.f32 %v114_v45  ;;  %v442_v45 = vld [vmem:[%s247_s28] ss:$0 sm:$0xff] }
  0xc1   :  { %365 = vmatpush.msrb.mxu1 %v341_v44 }
  0xc3   :  { %366 = vmatpush.msrb.mxu1 %v340_v51 }
  0xc5   :  { %367 = vmatpush.msrb.mxu1 %v339_v52 }
  0xc6   :  { %v446_v47 = vpop.eup %445 }
  0xc7   :  { %v121_v48 = vsel %vm120_vm0, %v446_v47, %v69_v26  ;;  %v223_v26 = vstv %s222_s2  ;;  %368 = vmatpush.msrb.mxu1 %v338_v53 }
  0xc8   :  { %164 = vmatmul.f32.vlgmr.msra.gmra.mxu1 %v121_v48  ;;  %vm224_vm2 = vcmp.eq.s32.totalorder %v223_v26, 1 }
  0xc9   :  { %369 = vmatpush.msrb.mxu1 %v337_v54 }
  0xcb   :  { %370 = vmatpush.msrb.mxu1 %v336_v55 }
  0xcd   :  { %371 = vmatpush.msrb.mxu1 %v335_v56 }
 0x145   :  { %v165_v2 = vpop.f32.mrf.mxu1 }
 0x146   :  { %v166_v3 = vadd.f32 %v440_v1, %v165_v2  ;;  %v379_v2 = vstv %s378_s13 }
 0x147   :  { %vm380_vm5 = vcmp.eq.s32.totalorder %v379_v2, 1 }
 0x148   :  { %447 = vtanh.f32 %v166_v3 }
 0x14e   :  { %v448_v5 = vpop.eup %447 }
 0x14f   :  { %v173_v6 = vsel %vm172_vm1, %v448_v5, %v121_v48  ;;  %v275_v48 = vstv %s274_s3 }
 0x150   :  { %216 = vmatmul.f32.vlgmr.msra.gmra.mxu2 %v173_v6  ;;  %vm276_vm3 = vcmp.eq.s32.totalorder %v275_v48, 1 }
 0x1d3   :  { %v217_v24 = vpop.f32.mrf.mxu2 }
 0x1d4   :  { %v218_v25 = vadd.f32 %v441_v23, %v217_v24 }
 0x1d6   :  { %449 = vtanh.f32 %v218_v25 }
 0x1dc   :  { %v450_v27 = vpop.eup %449 }
 0x1dd   :  { %v225_v28 = vsel %vm224_vm2, %v450_v27, %v173_v6 }
 0x1de   :  { %268 = vmatmul.f32.vlgmr.msra.gmra.mxu3 %v225_v28 }
 0x261   :  { %v269_v46 = vpop.f32.mrf.mxu3 }
 0x262   :  { %v270_v47 = vadd.f32 %v442_v45, %v269_v46 }
 0x264   :  { %451 = vtanh.f32 %v270_v47 }
 0x26a   :  { %v452_v49 = vpop.eup %451 }
 0x26b   :  { %v277_v50 = vsel %vm276_vm3, %v452_v49, %v225_v28 }
 0x26c   :  { %320 = vmatmul.f32.vlgmr.msrb.gmra.mxu0 %v277_v50 }
 0x2e9   :  { %v321_v58 = vpop.f32.mrf.mxu0 }
 0x2ea   :  { %v322_v59 = vadd.f32 %v443_v57, %v321_v58 }
 0x2ec   :  { %453 = vtanh.f32 %v322_v59 }
 0x2f2   :  { %v454_v61 = vpop.eup %453 }
 0x2f3   :  { %v329_v62 = vsel %vm328_vm4, %v454_v61, %v277_v50 }
 0x2f4   :  { %372 = vmatmul.f32.vlgmr.msrb.gmra.mxu1 %v329_v62 }
 0x371   :  { %v373_v0 = vpop.f32.mrf.mxu1 }
 0x372   :  { %v374_v1 = vadd.f32 %v444_v63, %v373_v0 }
 0x374   :  { %455 = vtanh.f32 %v374_v1 }
 0x37a   :  { %v456_v3 = vpop.eup %455 }
 0x37b   :  { %v381_v4 = vsel %vm380_vm5, %v456_v3, %v329_v62 }
 0x37c   :  { %382 = vst [vmem:[#allocation10] sm:$0xff] %v381_v4 }
 0x37d   :  { %393 = dma.vmem_to_hbm [thread:$0]  %s389_s15, 128, %s391_s18, [#allocation6]  }
 0x37e   :  { %571 = dma.done.wait [#allocation6], 128  }
 0x37f   :  { %572 = vsyncadd [#allocation6], 4294967168 }
 0x380   :  { %398 = vsyncpa [#allocation5], 1 }
 0x381   :  { %399 = vsyncpa [#allocation8], 1 }
 0x382   :  { %400 = vsyncpa [#allocation6], 1 }

</bundles_post_ra>
